<compile_context>
chip_gen: v7x
topology: tpu7x:2x2x1
jax: 0.10.0
libtpu: 0.0.40
codegen_flags: <defaults>
</compile_context>

<pallas_src>
import functools

import jax
import jax.numpy as jnp
from jax.experimental import pallas as pl
from jax.experimental.pallas import tpu as pltpu


def _round_up(x, m):
    return -(-x // m) * m


def _make_conv_kernel(KH, KW, W_in, L_pad):
    """Kernel for one image: full-width stride-1 cross-correlation via KH*KW taps."""

    def kernel(x_ref, w_ref, o_ref):
        # x_ref: (C, HWp)        flattened spatial (+ tail pad), one image
        # w_ref: (KH*KW, OC, C)  one (OC, C) weight slab per tap
        # o_ref: (OC, L_pad)     full-width stride-1 output (lane-dense, padded)
        acc = None
        for kh in range(KH):
            base = kh * W_in
            for kw in range(KW):
                xs = x_ref[:, pl.ds(base + kw, L_pad)]      # (C, L_pad), static offset
                wk = w_ref[kh * KW + kw]                     # (OC, C), static index
                p = jnp.dot(wk, xs, preferred_element_type=jnp.float32)
                acc = p if acc is None else acc + p
        o_ref[...] = acc

    return kernel


@functools.partial(jax.jit, static_argnames=("stride", "compute_dtype"))
def conv2d_valid_nchw(x, weight, *, stride=1, compute_dtype=jnp.float32):
    """Valid (unpadded) strided cross-correlation. x: (N,C,H,W), weight: (OC,IC,KH,KW)."""
    N, C, H, W = x.shape
    OC, IC, KH, KW = weight.shape
    assert IC == C, (IC, C)

    OH = (H - KH) // stride + 1
    OW = (W - KW) // stride + 1
    OH1 = H - KH + 1                       # stride-1 output height
    OW1 = W - KW + 1                       # stride-1 output width (valid columns)
    L = OH1 * W                            # full-width flattened stride-1 output length
    L_pad = _round_up(L, 128)              # lane-dense output width (unmasked stores)
    # Tail pad so every tap's length-L_pad slice is in bounds.
    HWp = max(H * W, (KH - 1) * W + (KW - 1) + L_pad)

    x_flat = x.astype(compute_dtype).reshape(N, C, H * W)
    if HWp > H * W:
        x_flat = jnp.pad(x_flat, ((0, 0), (0, 0), (0, HWp - H * W)))

    # (KH*KW, OC, C), tap index = kh*KW + kw  (tiny; stays whole in VMEM)
    w_mat = weight.astype(compute_dtype).reshape(OC, C, KH * KW).transpose(2, 0, 1)

    out_full = pl.pallas_call(
        _make_conv_kernel(KH, KW, W, L_pad),
        out_shape=jax.ShapeDtypeStruct((N, OC, L_pad), jnp.float32),
        grid_spec=pltpu.PrefetchScalarGridSpec(
            num_scalar_prefetch=0,
            grid=(N,),
            in_specs=[
                pl.BlockSpec((None, C, HWp), lambda n: (n, 0, 0)),
                pl.BlockSpec((KH * KW, OC, C), lambda n: (0, 0, 0)),
            ],
            out_specs=pl.BlockSpec((None, OC, L_pad), lambda n: (n, 0, 0)),
        ),
        compiler_params=pltpu.CompilerParams(dimension_semantics=("parallel",)),
    )(x_flat, w_mat)

    # Drop the lane pad, keep only valid columns (w < OW1); columns >= OW1 of later
    # taps are wrap-around garbage.  Strided rows/cols pick every `stride`-th
    # stride-1 position, giving the strided-conv result directly in NCHW.
    out = out_full[:, :, :L].reshape(N, OC, OH1, W)
    out = out[:, :, : (OH - 1) * stride + 1 : stride, : (OW - 1) * stride + 1 : stride]
    return out


class CustomConv2D:
    """JAX/Pallas re-implementation of the PyTorch CustomConv2D forward pass."""

    def __init__(self, in_channels, out_channels, kernel_size,
                 stride=1, padding=0, bias=True, key=None,
                 compute_dtype=jnp.float32):
        self.in_channels = in_channels
        self.out_channels = out_channels
        self.kernel_size = kernel_size
        self.stride = stride
        self.padding = padding          # NOTE: ignored by the reference forward pass
        self.compute_dtype = compute_dtype
        if key is None:
            key = jax.random.PRNGKey(0)
        wkey, _ = jax.random.split(key)
        self.weight = (jax.random.normal(
            wkey, (out_channels, in_channels, kernel_size, kernel_size),
            dtype=jnp.float32) * 0.1)
        # Bias exists as a parameter but is never applied in the reference
        # custom_conv2d; kept only for parameter parity.
        self.bias = jnp.zeros((out_channels,), jnp.float32) if bias else None

    def __call__(self, x):
        return self.custom_conv2d(x, self.weight, self.bias,
                                  self.stride, self.padding)

    def custom_conv2d(self, x, weight, bias=None, stride=1, padding=0):
        # Reference semantics: valid cross-correlation with stride;
        # `padding` and `bias` are ignored (as in the original module).
        out = conv2d_valid_nchw(x.astype(jnp.float32), weight,
                                stride=stride, compute_dtype=self.compute_dtype)
        return out.astype(jnp.float32)


if __name__ == "__main__":
    key = jax.random.PRNGKey(0)
    xkey, wkey, wkey2 = jax.random.split(key, 3)

    # Small shapes consistent with the module: batch=2, C_in=4, H=W=16.
    x = jax.random.normal(xkey, (2, 4, 16, 16), dtype=jnp.float32)

    # stride=1 (the default/test case)
    conv = CustomConv2D(in_channels=4, out_channels=8, kernel_size=3,
                        stride=1, padding=0, bias=True, key=wkey)
    y = jax.block_until_ready(conv(x))
    y_ref = jax.lax.conv_general_dilated(
        x, conv.weight, window_strides=(1, 1), padding="VALID",
        dimension_numbers=("NCHW", "OIHW", "NCHW"))
    assert y.shape == (2, 8, 14, 14), y.shape
    assert jnp.allclose(y, y_ref, atol=1e-4, rtol=1e-4)

    # stride=2 exercises the strided-output path through the same kernel.
    conv2 = CustomConv2D(in_channels=4, out_channels=8, kernel_size=3,
                         stride=2, padding=0, bias=True, key=wkey2)
    y2 = jax.block_until_ready(conv2(x))
    y2_ref = jax.lax.conv_general_dilated(
        x, conv2.weight, window_strides=(2, 2), padding="VALID",
        dimension_numbers=("NCHW", "OIHW", "NCHW"))
    assert y2.shape == (2, 8, 7, 7), y2.shape
    assert jnp.allclose(y2, y2_ref, atol=1e-4, rtol=1e-4)

    print("KERNEL_OK")
</pallas_src>

<mosaic_0001>
module attributes {stable_mosaic.version = 11 : i64} {
  func.func @kernel(%arg0: i32, %arg1: memref<1x4x290xf32, #tpu.memory_space<vmem>>, %arg2: memref<9x8x4xf32, #tpu.memory_space<vmem>>, %arg3: memref<1x8x256xf32, #tpu.memory_space<vmem>>) attributes {dimension_semantics = [#tpu.dimension_semantics<parallel>], iteration_bounds = array<i64: 2>, scalar_prefetch = 0 : i64, scratch_operands = 0 : i64, tpu.core_type = #tpu.core_type<tc>, window_params = [{transform_indices = @transform_0, window_bounds = array<i64: 1, 4, 290>}, {pipeline_mode = #tpu.pipeline_mode<synchronous>, transform_indices = @transform_1, window_bounds = array<i64: 9, 8, 4>}, {transform_indices = @transform_2, window_bounds = array<i64: 1, 8, 256>}]} {
    %c0 = arith.constant 0 : index
    %c0_0 = arith.constant 0 : index
    %c0_1 = arith.constant 0 : index
    %0 = vector.load %arg1[%c0, %c0_0, %c0_1] : memref<1x4x290xf32, #tpu.memory_space<vmem>>, vector<1x4x256xf32>
    %1 = vector.shape_cast %0 : vector<1x4x256xf32> to vector<4x256xf32>
    %c0_2 = arith.constant 0 : index
    %c0_3 = arith.constant 0 : index
    %c0_4 = arith.constant 0 : index
    %2 = vector.load %arg2[%c0_2, %c0_3, %c0_4] : memref<9x8x4xf32, #tpu.memory_space<vmem>>, vector<1x8x4xf32>
    %3 = vector.shape_cast %2 : vector<1x8x4xf32> to vector<8x4xf32>
    %cst = arith.constant dense<0.000000e+00> : vector<8x256xf32>
    %4 = tpu.matmul %3, %1, %cst {dimension_numbers = #tpu.dot_dimension_numbers<[1], [0], [0], [1], [0, 0, 1, 1], [], []>} : vector<8x4xf32>, vector<4x256xf32>, vector<8x256xf32> -> vector<8x256xf32>
    %c0_5 = arith.constant 0 : index
    %c0_6 = arith.constant 0 : index
    %c1 = arith.constant 1 : index
    %5 = vector.load %arg1[%c0_5, %c0_6, %c1] : memref<1x4x290xf32, #tpu.memory_space<vmem>>, vector<1x4x256xf32>
    %6 = vector.shape_cast %5 : vector<1x4x256xf32> to vector<4x256xf32>
    %c1_7 = arith.constant 1 : index
    %c0_8 = arith.constant 0 : index
    %c0_9 = arith.constant 0 : index
    %7 = vector.load %arg2[%c1_7, %c0_8, %c0_9] : memref<9x8x4xf32, #tpu.memory_space<vmem>>, vector<1x8x4xf32>
    %8 = vector.shape_cast %7 : vector<1x8x4xf32> to vector<8x4xf32>
    %cst_10 = arith.constant dense<0.000000e+00> : vector<8x256xf32>
    %9 = tpu.matmul %8, %6, %cst_10 {dimension_numbers = #tpu.dot_dimension_numbers<[1], [0], [0], [1], [0, 0, 1, 1], [], []>} : vector<8x4xf32>, vector<4x256xf32>, vector<8x256xf32> -> vector<8x256xf32>
    %10 = arith.addf %4, %9 : vector<8x256xf32>
    %c0_11 = arith.constant 0 : index
    %c0_12 = arith.constant 0 : index
    %c2 = arith.constant 2 : index
    %11 = vector.load %arg1[%c0_11, %c0_12, %c2] : memref<1x4x290xf32, #tpu.memory_space<vmem>>, vector<1x4x256xf32>
    %12 = vector.shape_cast %11 : vector<1x4x256xf32> to vector<4x256xf32>
    %c2_13 = arith.constant 2 : index
    %c0_14 = arith.constant 0 : index
    %c0_15 = arith.constant 0 : index
    %13 = vector.load %arg2[%c2_13, %c0_14, %c0_15] : memref<9x8x4xf32, #tpu.memory_space<vmem>>, vector<1x8x4xf32>
    %14 = vector.shape_cast %13 : vector<1x8x4xf32> to vector<8x4xf32>
    %cst_16 = arith.constant dense<0.000000e+00> : vector<8x256xf32>
    %15 = tpu.matmul %14, %12, %cst_16 {dimension_numbers = #tpu.dot_dimension_numbers<[1], [0], [0], [1], [0, 0, 1, 1], [], []>} : vector<8x4xf32>, vector<4x256xf32>, vector<8x256xf32> -> vector<8x256xf32>
    %16 = arith.addf %10, %15 : vector<8x256xf32>
    %c0_17 = arith.constant 0 : index
    %c0_18 = arith.constant 0 : index
    %c16 = arith.constant 16 : index
    %17 = vector.load %arg1[%c0_17, %c0_18, %c16] : memref<1x4x290xf32, #tpu.memory_space<vmem>>, vector<1x4x256xf32>
    %18 = vector.shape_cast %17 : vector<1x4x256xf32> to vector<4x256xf32>
    %c3 = arith.constant 3 : index
    %c0_19 = arith.constant 0 : index
    %c0_20 = arith.constant 0 : index
    %19 = vector.load %arg2[%c3, %c0_19, %c0_20] : memref<9x8x4xf32, #tpu.memory_space<vmem>>, vector<1x8x4xf32>
    %20 = vector.shape_cast %19 : vector<1x8x4xf32> to vector<8x4xf32>
    %cst_21 = arith.constant dense<0.000000e+00> : vector<8x256xf32>
    %21 = tpu.matmul %20, %18, %cst_21 {dimension_numbers = #tpu.dot_dimension_numbers<[1], [0], [0], [1], [0, 0, 1, 1], [], []>} : vector<8x4xf32>, vector<4x256xf32>, vector<8x256xf32> -> vector<8x256xf32>
    %22 = arith.addf %16, %21 : vector<8x256xf32>
    %c0_22 = arith.constant 0 : index
    %c0_23 = arith.constant 0 : index
    %c17 = arith.constant 17 : index
    %23 = vector.load %arg1[%c0_22, %c0_23, %c17] : memref<1x4x290xf32, #tpu.memory_space<vmem>>, vector<1x4x256xf32>
    %24 = vector.shape_cast %23 : vector<1x4x256xf32> to vector<4x256xf32>
    %c4 = arith.constant 4 : index
    %c0_24 = arith.constant 0 : index
    %c0_25 = arith.constant 0 : index
    %25 = vector.load %arg2[%c4, %c0_24, %c0_25] : memref<9x8x4xf32, #tpu.memory_space<vmem>>, vector<1x8x4xf32>
    %26 = vector.shape_cast %25 : vector<1x8x4xf32> to vector<8x4xf32>
    %cst_26 = arith.constant dense<0.000000e+00> : vector<8x256xf32>
    %27 = tpu.matmul %26, %24, %cst_26 {dimension_numbers = #tpu.dot_dimension_numbers<[1], [0], [0], [1], [0, 0, 1, 1], [], []>} : vector<8x4xf32>, vector<4x256xf32>, vector<8x256xf32> -> vector<8x256xf32>
    %28 = arith.addf %22, %27 : vector<8x256xf32>
    %c0_27 = arith.constant 0 : index
    %c0_28 = arith.constant 0 : index
    %c18 = arith.constant 18 : index
    %29 = vector.load %arg1[%c0_27, %c0_28, %c18] : memref<1x4x290xf32, #tpu.memory_space<vmem>>, vector<1x4x256xf32>
    %30 = vector.shape_cast %29 : vector<1x4x256xf32> to vector<4x256xf32>
    %c5 = arith.constant 5 : index
    %c0_29 = arith.constant 0 : index
    %c0_30 = arith.constant 0 : index
    %31 = vector.load %arg2[%c5, %c0_29, %c0_30] : memref<9x8x4xf32, #tpu.memory_space<vmem>>, vector<1x8x4xf32>
    %32 = vector.shape_cast %31 : vector<1x8x4xf32> to vector<8x4xf32>
    %cst_31 = arith.constant dense<0.000000e+00> : vector<8x256xf32>
    %33 = tpu.matmul %32, %30, %cst_31 {dimension_numbers = #tpu.dot_dimension_numbers<[1], [0], [0], [1], [0, 0, 1, 1], [], []>} : vector<8x4xf32>, vector<4x256xf32>, vector<8x256xf32> -> vector<8x256xf32>
    %34 = arith.addf %28, %33 : vector<8x256xf32>
    %c0_32 = arith.constant 0 : index
    %c0_33 = arith.constant 0 : index
    %c32 = arith.constant 32 : index
    %35 = vector.load %arg1[%c0_32, %c0_33, %c32] : memref<1x4x290xf32, #tpu.memory_space<vmem>>, vector<1x4x256xf32>
    %36 = vector.shape_cast %35 : vector<1x4x256xf32> to vector<4x256xf32>
    %c6 = arith.constant 6 : index
    %c0_34 = arith.constant 0 : index
    %c0_35 = arith.constant 0 : index
    %37 = vector.load %arg2[%c6, %c0_34, %c0_35] : memref<9x8x4xf32, #tpu.memory_space<vmem>>, vector<1x8x4xf32>
    %38 = vector.shape_cast %37 : vector<1x8x4xf32> to vector<8x4xf32>
    %cst_36 = arith.constant dense<0.000000e+00> : vector<8x256xf32>
    %39 = tpu.matmul %38, %36, %cst_36 {dimension_numbers = #tpu.dot_dimension_numbers<[1], [0], [0], [1], [0, 0, 1, 1], [], []>} : vector<8x4xf32>, vector<4x256xf32>, vector<8x256xf32> -> vector<8x256xf32>
    %40 = arith.addf %34, %39 : vector<8x256xf32>
    %c0_37 = arith.constant 0 : index
    %c0_38 = arith.constant 0 : index
    %c33 = arith.constant 33 : index
    %41 = vector.load %arg1[%c0_37, %c0_38, %c33] : memref<1x4x290xf32, #tpu.memory_space<vmem>>, vector<1x4x256xf32>
    %42 = vector.shape_cast %41 : vector<1x4x256xf32> to vector<4x256xf32>
    %c7 = arith.constant 7 : index
    %c0_39 = arith.constant 0 : index
    %c0_40 = arith.constant 0 : index
    %43 = vector.load %arg2[%c7, %c0_39, %c0_40] : memref<9x8x4xf32, #tpu.memory_space<vmem>>, vector<1x8x4xf32>
    %44 = vector.shape_cast %43 : vector<1x8x4xf32> to vector<8x4xf32>
    %cst_41 = arith.constant dense<0.000000e+00> : vector<8x256xf32>
    %45 = tpu.matmul %44, %42, %cst_41 {dimension_numbers = #tpu.dot_dimension_numbers<[1], [0], [0], [1], [0, 0, 1, 1], [], []>} : vector<8x4xf32>, vector<4x256xf32>, vector<8x256xf32> -> vector<8x256xf32>
    %46 = arith.addf %40, %45 : vector<8x256xf32>
    %c0_42 = arith.constant 0 : index
    %c0_43 = arith.constant 0 : index
    %c34 = arith.constant 34 : index
    %47 = vector.load %arg1[%c0_42, %c0_43, %c34] : memref<1x4x290xf32, #tpu.memory_space<vmem>>, vector<1x4x256xf32>
    %48 = vector.shape_cast %47 : vector<1x4x256xf32> to vector<4x256xf32>
    %c8 = arith.constant 8 : index
    %c0_44 = arith.constant 0 : index
    %c0_45 = arith.constant 0 : index
    %49 = vector.load %arg2[%c8, %c0_44, %c0_45] : memref<9x8x4xf32, #tpu.memory_space<vmem>>, vector<1x8x4xf32>
    %50 = vector.shape_cast %49 : vector<1x8x4xf32> to vector<8x4xf32>
    %cst_46 = arith.constant dense<0.000000e+00> : vector<8x256xf32>
    %51 = tpu.matmul %50, %48, %cst_46 {dimension_numbers = #tpu.dot_dimension_numbers<[1], [0], [0], [1], [0, 0, 1, 1], [], []>} : vector<8x4xf32>, vector<4x256xf32>, vector<8x256xf32> -> vector<8x256xf32>
    %52 = arith.addf %46, %51 : vector<8x256xf32>
    %c0_47 = arith.constant 0 : index
    %c0_48 = arith.constant 0 : index
    %c0_49 = arith.constant 0 : index
    %53 = vector.load %arg3[%c0_47, %c0_48, %c0_49] : memref<1x8x256xf32, #tpu.memory_space<vmem>>, vector<1x8x256xf32>
    %54 = vector.shape_cast %53 : vector<1x8x256xf32> to vector<8x256xf32>
    %55 = vector.shape_cast %52 : vector<8x256xf32> to vector<1x8x256xf32>
    tpu.vector_store %arg3[%c0_47, %c0_48, %c0_49], %55 {strides = array<i32>} : memref<1x8x256xf32, #tpu.memory_space<vmem>>, vector<1x8x256xf32>,
    return
  }
  func.func @transform_0(%arg0: i32) -> (i32, i32, i32) {
    %c0_i32 = arith.constant 0 : i32
    %c0_i32_0 = arith.constant 0 : i32
    %c0_i32_1 = arith.constant 0 : i32
    return %arg0, %c0_i32, %c0_i32_0 : i32, i32, i32
  }
  func.func @transform_1(%arg0: i32) -> (i32, i32, i32) {
    %c0_i32 = arith.constant 0 : i32
    %c0_i32_0 = arith.constant 0 : i32
    %c0_i32_1 = arith.constant 0 : i32
    %c0_i32_2 = arith.constant 0 : i32
    return %c0_i32, %c0_i32_0, %c0_i32_1 : i32, i32, i32
  }
  func.func @transform_2(%arg0: i32) -> (i32, i32, i32) {
    %c0_i32 = arith.constant 0 : i32
    %c0_i32_0 = arith.constant 0 : i32
    %c0_i32_1 = arith.constant 0 : i32
    return %arg0, %c0_i32, %c0_i32_0 : i32, i32, i32
  }
}

</mosaic_0001>

<bundles_post_ra>
// kernel: conv2d_valid_nchw.1
= control target key start
LH: loop header
LB: loop body
LE: loop exit
PB: predicated region body
PF: predicated region fallthrough
CT: control target
= control target key end

     0   :  { %s1161_s9 = smov 0   ;;  %s1288_s0 = inlined_call_operand.vmem [shape: f32[2,4,290], index: 0, kind: input, shape index: {}]   ;;  %s1289_s1 = inlined_call_operand.vmem [shape: f32[9,8,4], index: 1, kind: input, shape index: {}]   ;;  %s1290_s2 = inlined_call_operand.vmem [shape: f32[2,8,256], index: 2, kind: output, shape index: {}]  }
   0x1 LB: > { %s1048_s10 = sadd.s32 4294967295, %s1135_s9   ;;  %p1052_p0 = scmp.ge.s32.totalorder %s1135_s9, 1  ;;  %s1135_s9 = sphi %s1161_s9, %s12_s9  }
   0x2   : > { %p112_p1 = scmp.lt.s32.totalorder %s1135_s9, 3 }
   0x4   : > { %p113_p2 = pnand %p1052_p0, %p112_p1 }
   0x5   : > { %p134_p3 = scmp.lt.s32.totalorder (!%p113_p2), %s1048_s10, 1  ;;  %s1137_s15 = smov (!%p113_p2), 111   ;;  %v1138_v4 = vmov (!%p113_p2), 0.0   ;;  %vm158_vm0 = vcmask (!%p113_p2), 1039360   ;;  %vm165_vm1 = vcmask (!%p113_p2), 1043456   ;;  %vm524_vm2 = vcmask (!%p113_p2), 908288  }
   0x6   : > { %116 = sbr.rel (%p113_p2) target bundleno = 395 (0x18b), region = 28  ;;  %598 = vmatprep.mubr.f32.mxu0 (!%p113_p2), %v1138_v4  ;;  %234 = vmatprep.mubr.f32.mxu1 (!%p113_p2), %v1138_v4  ;;  %s1139_s16 = smov (!%p113_p2), 127   ;;  %vm161_vm3 = vcmask (!%p113_p2), 31744   ;;  %v1071_v20 = vld [vmem:[%s1289_s1 + $0x20] sm:$0xff] (!%p113_p2)  ;;  %vm620_vm4 = vcmask (!%p113_p2), 900096   ;;  %v1056_v23 = vld [vmem:[%s1289_s1 + $0x8] sm:$0xff] (!%p113_p2) }
   0x7   : > { %s1140_s17 = smov (!%p113_p2), 110   ;;  %s1141_s18 = smov (!%p113_p2), 96   ;;  %v1075_v29 = vld [vmem:[%s1289_s1 + $0x28] sm:$0xff] (!%p113_p2)  ;;  %vm716_vm5 = vcmask (!%p113_p2), 785408   ;;  %v145_v32 = vld [vmem:[%s1289_s1] sm:$0xff] (!%p113_p2)  ;;  %vm332_vm6 = vcmask (!%p113_p2), 1031168  }
   0x8   : > { %s1142_s19 = smov (!%p113_p2), 126   ;;  %s1143_s20 = smov (!%p113_p2), 95   ;;  %v1079_v38 = vld [vmem:[%s1289_s1 + $0x30] sm:$0xff] (!%p113_p2)  ;;  %vm812_vm7 = vcmask (!%p113_p2), 777216   ;;  %v1083_v47 = vld [vmem:[%s1289_s1 + $0x38] sm:$0xff] (!%p113_p2)  ;;  %vm428_vm8 = vcmask (!%p113_p2), 916480  }
   0x9   : > { %s1144_s21 = smov (!%p113_p2), 112   ;;  %s1145_s22 = smov (!%p113_p2), 94   ;;  %v1063_v44 = vld [vmem:[%s1289_s1 + $0x10] sm:$0xff] (!%p113_p2)  ;;  %vm908_vm9 = vcmask (!%p113_p2), 769024   ;;  %v1067_v56 = vld [vmem:[%s1289_s1 + $0x18] sm:$0xff] (!%p113_p2)  ;;  %v1087_v57 = vld [vmem:[%s1289_s1 + $0x40] sm:$0xff] (!%p113_p2) }
   0xd   : > { %s1292_s10 = smov (!%p134_p3, %s1048_s10), 1 }
   0xe   : > { %s1110_s11 = smul.u32 12, %s1292_s10 }
  0x10   : > { %s1175_s14 = scalar_lea.vmem %s1288_s0, %s1110_s11 }
  0x11   : > { %v512_v0 = vld [vmem:[%s1175_s14 + $0x8] sm:$0xf]  ;;  %v1179_v1 = vld [vmem:[%s1175_s14] sm:$0xff] }
  0x12   : > { %522 = vrot.lane.b32.xlu0 %v512_v0, %s1137_s15  ;;  %518 = vrot.lane.b32.xlu1 %v1179_v1, %s1137_s15  ;;  %v1184_v2 = vcombine.high %v1179_v1, %v1179_v1  ;;  %v146_v3 = vld [vmem:[%s1175_s14 + $0x8] sm:$0xf] }
  0x13   : > { %v608_v5 = vld [vmem:[%s1175_s14 + $0x8] sm:$0xf] }
  0x14   : > { %v704_v6 = vld [vmem:[%s1175_s14 + $0x8] sm:$0xf] }
  0x15   : > { %v320_v7 = vld [vmem:[%s1175_s14 + $0x8] sm:$0xf] }
  0x16   : > { %156 = vrot.lane.b32.xlu0 %v146_v3, %s1139_s16  ;;  %154 = vrot.lane.b32.xlu1 %v1184_v2, %s1139_s16  ;;  %v800_v8 = vld [vmem:[%s1175_s14 + $0x8] sm:$0xf] }
  0x17   : > { %v416_v9 = vld [vmem:[%s1175_s14 + $0x8] sm:$0xf] }
  0x18   : > { %v896_v10 = vld [vmem:[%s1175_s14 + $0x8] sm:$0xf] }
  0x1a   : > { %520 = vrot.lane.b32.xlu0 %v1184_v2, %s1137_s15  ;;  %616 = vrot.lane.b32.xlu1 %v1184_v2, %s1140_s17  ;;  %s1093_s15 = sshll.u32 %s1292_s10, 4 }
  0x1e   : > { %618 = vrot.lane.b32.xlu0 %v608_v5, %s1140_s17  ;;  %152 = vrot.lane.b32.xlu1 %v1179_v1, %s1139_s16 }
  0x22   : > { %614 = vrot.lane.b32.xlu0 %v1179_v1, %s1140_s17  ;;  %712 = vrot.lane.b32.xlu1 %v1184_v2, %s1141_s18 }
  0x26   : > { %714 = vrot.lane.b32.xlu0 %v704_v6, %s1141_s18  ;;  %710 = vrot.lane.b32.xlu1 %v1179_v1, %s1141_s18  ;;  %s143_s18 = scalar_lea.vmem %s1290_s2, %s1093_s15 }
  0x2a   : > { %328 = vrot.lane.b32.xlu0 %v1184_v2, %s1142_s19  ;;  %330 = vrot.lane.b32.xlu1 %v320_v7, %s1142_s19 }
  0x2e   : > { %808 = vrot.lane.b32.xlu0 %v1184_v2, %s1143_s20  ;;  %810 = vrot.lane.b32.xlu1 %v800_v8, %s1143_s20 }
  0x32   : > { %326 = vrot.lane.b32.xlu0 %v1179_v1, %s1142_s19  ;;  %806 = vrot.lane.b32.xlu1 %v1179_v1, %s1143_s20 }
  0x36   : > { %424 = vrot.lane.b32.xlu0 %v1184_v2, %s1144_s21  ;;  %426 = vrot.lane.b32.xlu1 %v416_v9, %s1144_s21 }
  0x3a   : > { %904 = vrot.lane.b32.xlu0 %v1184_v2, %s1145_s22  ;;  %906 = vrot.lane.b32.xlu1 %v896_v10, %s1145_s22 }
  0x3e   : > { %422 = vrot.lane.b32.xlu0 %v1179_v1, %s1144_s21  ;;  %902 = vrot.lane.b32.xlu1 %v1179_v1, %s1145_s22 }
  0x84   : > { %v523_v11 = vpop.permute.xlu0 %522  ;;  %v519_v12 = vpop.permute.xlu1 %518 }
  0x88   : > { %v157_v13 = vpop.permute.xlu0 %156  ;;  %v155_v14 = vpop.permute.xlu1 %154 }
  0x89   : > { %v160_v15 = vsel %vm158_vm0, %v155_v14, %v157_v13 }
  0x8a   : > { %1057 = vmatprep.subr.msk.mxu1 %vm165_vm1, %v160_v15 }
  0x8c   : > { %v521_v16 = vpop.permute.xlu0 %520  ;;  %v617_v17 = vpop.permute.xlu1 %616 }
  0x8d   : > { %v526_v18 = vsel %vm524_vm2, %v521_v16, %v523_v11  ;;  %v525_v19 = vsel %vm524_vm2, %v519_v12, %v521_v16 }
  0x8e   : > { %1072 = vmatprep.subr.msk.mxu0 %vm165_vm1, %v526_v18 }
  0x8f   : > { %1073 = vmatpush1.msk.msra.mxu0 %vm165_vm1, %v525_v19 }
  0x90   : > { %v619_v21 = vpop.permute.xlu0 %618  ;;  %v153_v22 = vpop.permute.xlu1 %152  ;;  %1074 = vmatmul.mubr.msk.f32.vlgmr.msra.gmra.mrb[0].mxu0 %vm161_vm3, %v1071_v20 }
  0x91   : > { %v622_v24 = vsel %vm620_vm4, %v617_v17, %v619_v21  ;;  %v159_v25 = vsel %vm158_vm0, %v153_v22, %v155_v14  ;;  %694 = vmatprep.mubr.f32.mxu0 %v1138_v4 }
  0x92   : > { %1058 = vmatpush1.msk.msra.mxu1 %vm165_vm1, %v159_v25  ;;  %1076 = vmatprep.subr.msk.mxu0 %vm165_vm1, %v622_v24 }
  0x93   : > { %1059 = vmatmul.mubr.msk.f32.vlgmr.msra.gmra.mrb[0].mxu1 %vm161_vm3, %v1056_v23  ;;  %1060 = vmatprep.subr.msk.mxu1 %vm165_vm1, %v1184_v2 }
  0x94   : > { %v615_v26 = vpop.permute.xlu0 %614  ;;  %v713_v27 = vpop.permute.xlu1 %712  ;;  %1061 = vmatpush1.msk.msra.mxu1 %vm165_vm1, %v1179_v1  ;;  %312 = vmatprep.mubr.f32.mxu1 %v1138_v4 }
  0x95   : > { %v621_v28 = vsel %vm620_vm4, %v615_v26, %v617_v17 }
  0x96   : > { %1077 = vmatpush1.msk.msra.mxu0 %vm165_vm1, %v621_v28 }
  0x98   : > { %v715_v30 = vpop.permute.xlu0 %714  ;;  %v711_v31 = vpop.permute.xlu1 %710  ;;  %1078 = vmatmul.mubr.msk.f32.vlgmr.msra.gmra.mrb[0].mxu0 %vm161_vm3, %v1075_v29 }
  0x99   : > { %v718_v33 = vsel %vm716_vm5, %v713_v27, %v715_v30  ;;  %v717_v34 = vsel %vm716_vm5, %v711_v31, %v713_v27  ;;  %790 = vmatprep.mubr.f32.mxu0 %v1138_v4 }
  0x9a   : > { %1080 = vmatprep.subr.msk.mxu0 %vm165_vm1, %v718_v33 }
  0x9b   : > { %1081 = vmatpush1.msk.msra.mxu0 %vm165_vm1, %v717_v34  ;;  %1062 = vmatmul.mubr.msk.f32.vlgmr.msra.gmra.mrb[0].mxu1 %vm161_vm3, %v145_v32 }
  0x9c   : > { %v329_v35 = vpop.permute.xlu0 %328  ;;  %v331_v36 = vpop.permute.xlu1 %330  ;;  %406 = vmatprep.mubr.f32.mxu1 %v1138_v4 }
  0x9d   : > { %v334_v37 = vsel %vm332_vm6, %v329_v35, %v331_v36 }
  0x9e   : > { %1064 = vmatprep.subr.msk.mxu1 %vm165_vm1, %v334_v37 }
  0xa0   : > { %v809_v39 = vpop.permute.xlu0 %808  ;;  %v811_v40 = vpop.permute.xlu1 %810  ;;  %1082 = vmatmul.mubr.msk.f32.vlgmr.msra.gmra.mrb[0].mxu0 %vm161_vm3, %v1079_v38 }
  0xa1   : > { %v814_v41 = vsel %vm812_vm7, %v809_v39, %v811_v40  ;;  %886 = vmatprep.mubr.f32.mxu0 %v1138_v4 }
  0xa2   : > { %1084 = vmatprep.subr.msk.mxu0 %vm165_vm1, %v814_v41 }
  0xa4   : > { %v327_v42 = vpop.permute.xlu0 %326  ;;  %v807_v43 = vpop.permute.xlu1 %806 }
  0xa5   : > { %v333_v45 = vsel %vm332_vm6, %v327_v42, %v329_v35  ;;  %v813_v46 = vsel %vm812_vm7, %v807_v43, %v809_v39 }
  0xa6   : > { %1065 = vmatpush1.msk.msra.mxu1 %vm165_vm1, %v333_v45  ;;  %1085 = vmatpush1.msk.msra.mxu0 %vm165_vm1, %v813_v46 }
  0xa7   : > { %1066 = vmatmul.mubr.msk.f32.vlgmr.msra.gmra.mrb[0].mxu1 %vm161_vm3, %v1063_v44 }
  0xa8   : > { %v425_v48 = vpop.permute.xlu0 %424  ;;  %v427_v49 = vpop.permute.xlu1 %426  ;;  %1086 = vmatmul.mubr.msk.f32.vlgmr.msra.gmra.mrb[0].mxu0 %vm161_vm3, %v1083_v47  ;;  %502 = vmatprep.mubr.f32.mxu1 %v1138_v4 }
  0xa9   : > { %v430_v50 = vsel %vm428_vm8, %v425_v48, %v427_v49  ;;  %982 = vmatprep.mubr.f32.mxu0 %v1138_v4 }
  0xaa   : > { %1068 = vmatprep.subr.msk.mxu1 %vm165_vm1, %v430_v50 }
  0xac   : > { %v905_v51 = vpop.permute.xlu0 %904  ;;  %v907_v52 = vpop.permute.xlu1 %906 }
  0xad   : > { %v910_v53 = vsel %vm908_vm9, %v905_v51, %v907_v52 }
  0xae   : > { %1088 = vmatprep.subr.msk.mxu0 %vm165_vm1, %v910_v53 }
  0xb0   : > { %v423_v54 = vpop.permute.xlu0 %422  ;;  %v903_v55 = vpop.permute.xlu1 %902 }
  0xb1   : > { %v429_v58 = vsel %vm428_vm8, %v423_v54, %v425_v48  ;;  %v909_v59 = vsel %vm908_vm9, %v903_v55, %v905_v51 }
  0xb2   : > { %1069 = vmatpush1.msk.msra.mxu1 %vm165_vm1, %v429_v58  ;;  %1089 = vmatpush1.msk.msra.mxu0 %vm165_vm1, %v909_v59 }
  0xb3   : > { %1070 = vmatmul.mubr.msk.f32.vlgmr.msra.gmra.mrb[0].mxu1 %vm161_vm3, %v1067_v56  ;;  %1090 = vmatmul.mubr.msk.f32.vlgmr.msra.gmra.mrb[0].mxu0 %vm161_vm3, %v1087_v57 }
 0x186   : > { %v504_v60 = vpop.f32.mrb[0].mxu1  ;;  %v984_v61 = vpop.f32.mrb[0].mxu0 }
 0x187   : > { %v1094_v62 = vadd.f32 %v984_v61, %v504_v60  ;;  %v506_v63 = vpop.f32.mrb[1].mxu1  ;;  %v986_v0 = vpop.f32.mrb[1].mxu0 }
 0x188   : > { %v1095_v1 = vadd.f32 %v986_v0, %v506_v63 }
 0x189   : > { %991 = vst [vmem:[%s143_s18] sm:$0xff] %v1094_v62 }
 0x18a   : > { %992 = vst [vmem:[%s143_s18 + $0x8] sm:$0xff] %v1095_v1 }
 0x18b PF: > { %s12_s9 = sadd.s32 1, %s1135_s9  }
 0x18c   : > { %p9_p4 = scmp.ge.s32.totalorder %s12_s9, 4  }
 0x18e   :  { %11 = sbr.rel (!%p9_p4) target bundleno = 1 (0x1), region = 66 }

</bundles_post_ra>
